<compile_context>
chip_gen: v6e
topology: v6e:2x2x1
jax: 0.10.0
libtpu: 0.0.40
codegen_flags: <defaults>
</compile_context>

<pallas_src>
import functools

import jax
import jax.numpy as jnp
from jax.experimental import pallas as pl
from jax.experimental.pallas import tpu as pltpu


def _round_up(x, m):
    return (x + m - 1) // m * m


def _pad_to(x, axis, size):
    pad = size - x.shape[axis]
    if pad == 0:
        return x
    widths = [(0, 0)] * x.ndim
    widths[axis] = (0, pad)
    return jnp.pad(x, widths)


def _tile_vmem_bytes(shape, itemsize):
    """Rough (8,128)-padded VMEM footprint of one buffer of `shape`."""
    padded = list(shape)
    padded[-1] = _round_up(padded[-1], 128)
    if len(padded) >= 2:
        padded[-2] = _round_up(padded[-2], 8)
    n = 1
    for d in padded:
        n *= d
    return n * itemsize


def _pnn_fused_kernel(z_ref, emb_ref, w_ref, b_ref, out_ref, *, n_fields):
    """out = concat([z_flat, p_flat]) @ [Wz; Wp] + bias, p computed in-kernel."""
    emb = emb_ref[...]                                   # (TB, N, M), float32
    x_z = z_ref[...]                                     # (TB, N*M), compute dtype

    # p[b, n, k] = sum_m emb[b,n,m] * emb[b,k,m]; build per-n row blocks so that
    # after lane-concat the column index is n*N + k  == p.reshape(B, N*N) ordering.
    blocks = []
    for n in range(n_fields):
        blocks.append(jnp.sum(emb[:, n:n + 1, :] * emb, axis=2))   # (TB, N), f32 VPU
    p_flat = jnp.concatenate(blocks, axis=1)                        # (TB, N*N)

    x = jnp.concatenate([x_z, p_flat.astype(x_z.dtype)], axis=1)    # (TB, NM+NN)
    acc = jnp.dot(x, w_ref[...], preferred_element_type=jnp.float32)  # single MXU pass
    out_ref[...] = acc + b_ref[...]                                 # f32 bias add


def product_forward(z, sparse_embedding, w_z, w_p, l_b, *, block_b=256,
                    compute_dtype=jnp.bfloat16):
    """Forward pass of Product(mode='in')."""
    B, N, M = z.shape
    H = w_z.shape[-1]
    NM, NN = N * M, N * N
    K = NM + NN

    # ---- layout glue (plain JAX, outside the kernel) -------------------------
    Hp = _round_up(H, 128)                       # lane-dense output / weight slab
    TB = min(block_b, _round_up(B, 8))           # batch tile, multiple of 8
    Bp = _round_up(B, TB)

    z_flat = _pad_to(z.reshape(B, NM).astype(compute_dtype), 0, Bp)
    emb = _pad_to(sparse_embedding.astype(jnp.float32), 0, Bp)       # f32 pairwise math
    wz_mat = w_z.reshape(NM, H)                  # == w_z.permute(2,0,1).reshape(H,-1).T
    wp_mat = w_p.reshape(NN, H)                  # == w_p.permute(2,0,1).reshape(H,-1).T
    w_cat = _pad_to(jnp.concatenate([wz_mat, wp_mat], axis=0).astype(compute_dtype), 1, Hp)
    bias = _pad_to(l_b.reshape(1, H).astype(jnp.float32), 1, Hp)

    # ---- VMEM budget: double-buffered activation tiles + resident weights ----
    ib = jnp.dtype(compute_dtype).itemsize
    est = (2 * (_tile_vmem_bytes((TB, NM), ib)
                + _tile_vmem_bytes((TB, N, M), 4)
                + _tile_vmem_bytes((TB, Hp), 4))
           + 2 * (_tile_vmem_bytes((K, Hp), ib) + _tile_vmem_bytes((1, Hp), 4)))
    vmem_limit = int(min(max(4 * est, 16 << 20), 32 << 20))   # safe on v5e/v6e/v7x

    kernel = functools.partial(_pnn_fused_kernel, n_fields=N)
    out = pl.pallas_call(
        kernel,
        out_shape=jax.ShapeDtypeStruct((Bp, Hp), jnp.float32),
        grid=(Bp // TB,),
        in_specs=[
            pl.BlockSpec((TB, NM), lambda i: (i, 0)),
            pl.BlockSpec((TB, N, M), lambda i: (i, 0, 0)),
            pl.BlockSpec((K, Hp), lambda i: (0, 0)),     # weights stay VMEM-resident
            pl.BlockSpec((1, Hp), lambda i: (0, 0)),     # bias stays VMEM-resident
        ],
        out_specs=pl.BlockSpec((TB, Hp), lambda i: (i, 0)),
        compiler_params=pltpu.CompilerParams(
            dimension_semantics=("parallel",),
            vmem_limit_bytes=vmem_limit,
        ),
    )(z_flat, emb, w_cat, bias)

    return out[:B, :H]


if __name__ == "__main__":
    # Small shapes consistent with the module: batch B, feature_dim N, embedding_dim M, hidden H.
    B, N, M, H = 2, 4, 8, 32  # mode = 'in'

    key = jax.random.PRNGKey(0)
    k_z, k_emb, k_wz, k_wp, k_b = jax.random.split(key, 5)

    # torch.rand -> uniform [0, 1)
    z = jax.random.uniform(k_z, (B, N, M), dtype=jnp.float32)
    sparse_embedding = jax.random.uniform(k_emb, (B, N, M), dtype=jnp.float32)
    w_z = jax.random.uniform(k_wz, (N, M, H), dtype=jnp.float32)
    w_p = jax.random.uniform(k_wp, (N, N, H), dtype=jnp.float32)  # mode='in'
    l_b = jax.random.uniform(k_b, (H,), dtype=jnp.float32)

    out = product_forward(z, sparse_embedding, w_z, w_p, l_b)
    out = jax.block_until_ready(out)

    # Pure-JAX f32 reference (same semantics as the PyTorch forward).
    l_z_ref = z.reshape(B, -1) @ w_z.reshape(N * M, H)
    p_ref = jnp.einsum("bnm,bkm->bnk", sparse_embedding, sparse_embedding)
    l_p_ref = p_ref.reshape(B, -1) @ w_p.reshape(N * N, H)
    ref = l_p_ref + l_z_ref + l_b

    assert out.shape == (B, H)
    # bf16 MXU operands with f32 accumulation -> relaxed tolerance vs f32 reference.
    assert jnp.allclose(out, ref, rtol=2e-2, atol=2e-2), float(jnp.max(jnp.abs(out - ref)))

    print("KERNEL_OK")
</pallas_src>

<mosaic_0001>
module attributes {stable_mosaic.version = 11 : i64} {
  func.func @_pnn_fused_kernel(%arg0: i32, %arg1: memref<8x32xbf16, #tpu.memory_space<vmem>>, %arg2: memref<8x4x8xf32, #tpu.memory_space<vmem>>, %arg3: memref<48x128xbf16, #tpu.memory_space<vmem>>, %arg4: memref<1x128xf32, #tpu.memory_space<vmem>>, %arg5: memref<8x128xf32, #tpu.memory_space<vmem>>) attributes {dimension_semantics = [#tpu.dimension_semantics<parallel>], iteration_bounds = array<i64: 1>, scalar_prefetch = 0 : i64, scratch_operands = 0 : i64, tpu.core_type = #tpu.core_type<tc>, window_params = [{transform_indices = @transform_0, window_bounds = array<i64: 8, 32>}, {transform_indices = @transform_1, window_bounds = array<i64: 8, 4, 8>}, {pipeline_mode = #tpu.pipeline_mode<synchronous>, transform_indices = @transform_2, window_bounds = array<i64: 48, 128>}, {pipeline_mode = #tpu.pipeline_mode<synchronous>, transform_indices = @transform_3, window_bounds = array<i64: 1, 128>}, {transform_indices = @transform_4, window_bounds = array<i64: 8, 128>}]} {
    %c0 = arith.constant 0 : index
    %c0_0 = arith.constant 0 : index
    %c0_1 = arith.constant 0 : index
    %0 = vector.load %arg2[%c0, %c0_0, %c0_1] : memref<8x4x8xf32, #tpu.memory_space<vmem>>, vector<8x4x8xf32>
    %c0_2 = arith.constant 0 : index
    %c0_3 = arith.constant 0 : index
    %1 = vector.load %arg1[%c0_2, %c0_3] : memref<8x32xbf16, #tpu.memory_space<vmem>>, vector<8x32xbf16>
    %2 = vector.extract_strided_slice %0 {offsets = [0, 0, 0], sizes = [8, 1, 8], strides = [1, 1, 1]} : vector<8x4x8xf32> to vector<8x1x8xf32>
    %3 = vector.broadcast %2 : vector<8x1x8xf32> to vector<8x4x8xf32>
    %4 = arith.mulf %3, %0 : vector<8x4x8xf32>
    %cst = arith.constant dense<0.000000e+00> : vector<8x4xf32>
    %5 = vector.multi_reduction <add>, %4, %cst [2] : vector<8x4x8xf32> to vector<8x4xf32>
    %6 = vector.extract_strided_slice %0 {offsets = [0, 1, 0], sizes = [8, 1, 8], strides = [1, 1, 1]} : vector<8x4x8xf32> to vector<8x1x8xf32>
    %7 = vector.broadcast %6 : vector<8x1x8xf32> to vector<8x4x8xf32>
    %8 = arith.mulf %7, %0 : vector<8x4x8xf32>
    %cst_4 = arith.constant dense<0.000000e+00> : vector<8x4xf32>
    %9 = vector.multi_reduction <add>, %8, %cst_4 [2] : vector<8x4x8xf32> to vector<8x4xf32>
    %10 = vector.extract_strided_slice %0 {offsets = [0, 2, 0], sizes = [8, 1, 8], strides = [1, 1, 1]} : vector<8x4x8xf32> to vector<8x1x8xf32>
    %11 = vector.broadcast %10 : vector<8x1x8xf32> to vector<8x4x8xf32>
    %12 = arith.mulf %11, %0 : vector<8x4x8xf32>
    %cst_5 = arith.constant dense<0.000000e+00> : vector<8x4xf32>
    %13 = vector.multi_reduction <add>, %12, %cst_5 [2] : vector<8x4x8xf32> to vector<8x4xf32>
    %14 = vector.extract_strided_slice %0 {offsets = [0, 3, 0], sizes = [8, 1, 8], strides = [1, 1, 1]} : vector<8x4x8xf32> to vector<8x1x8xf32>
    %15 = vector.broadcast %14 : vector<8x1x8xf32> to vector<8x4x8xf32>
    %16 = arith.mulf %15, %0 : vector<8x4x8xf32>
    %cst_6 = arith.constant dense<0.000000e+00> : vector<8x4xf32>
    %17 = vector.multi_reduction <add>, %16, %cst_6 [2] : vector<8x4x8xf32> to vector<8x4xf32>
    %18 = tpu.concatenate %5, %9, %13, %17 in 1 : vector<8x4xf32>, vector<8x4xf32>, vector<8x4xf32>, vector<8x4xf32> -> vector<8x16xf32>
    %19 = arith.truncf %18 : vector<8x16xf32> to vector<8x16xbf16>
    %20 = tpu.concatenate %1, %19 in 1 : vector<8x32xbf16>, vector<8x16xbf16> -> vector<8x48xbf16>
    %c0_7 = arith.constant 0 : index
    %c0_8 = arith.constant 0 : index
    %21 = vector.load %arg3[%c0_7, %c0_8] : memref<48x128xbf16, #tpu.memory_space<vmem>>, vector<48x128xbf16>
    %cst_9 = arith.constant dense<0.000000e+00> : vector<8x128xf32>
    %22 = tpu.matmul %20, %21, %cst_9 {dimension_numbers = #tpu.dot_dimension_numbers<[1], [0], [0], [1], [0, 0, 1, 1], [], []>} : vector<8x48xbf16>, vector<48x128xbf16>, vector<8x128xf32> -> vector<8x128xf32>
    %c0_10 = arith.constant 0 : index
    %c0_11 = arith.constant 0 : index
    %23 = vector.load %arg4[%c0_10, %c0_11] : memref<1x128xf32, #tpu.memory_space<vmem>>, vector<1x128xf32>
    %24 = vector.broadcast %23 : vector<1x128xf32> to vector<8x128xf32>
    %25 = arith.addf %22, %24 : vector<8x128xf32>
    %c0_12 = arith.constant 0 : index
    %c0_13 = arith.constant 0 : index
    %26 = vector.load %arg5[%c0_12, %c0_13] : memref<8x128xf32, #tpu.memory_space<vmem>>, vector<8x128xf32>
    tpu.vector_store %arg5[%c0_12, %c0_13], %25 {strides = array<i32>} : memref<8x128xf32, #tpu.memory_space<vmem>>, vector<8x128xf32>,
    return
  }
  func.func @transform_0(%arg0: i32) -> (i32, i32) {
    %c0_i32 = arith.constant 0 : i32
    %c0_i32_0 = arith.constant 0 : i32
    return %arg0, %c0_i32 : i32, i32
  }
  func.func @transform_1(%arg0: i32) -> (i32, i32, i32) {
    %c0_i32 = arith.constant 0 : i32
    %c0_i32_0 = arith.constant 0 : i32
    %c0_i32_1 = arith.constant 0 : i32
    return %arg0, %c0_i32, %c0_i32_0 : i32, i32, i32
  }
  func.func @transform_2(%arg0: i32) -> (i32, i32) {
    %c0_i32 = arith.constant 0 : i32
    %c0_i32_0 = arith.constant 0 : i32
    %c0_i32_1 = arith.constant 0 : i32
    return %c0_i32, %c0_i32_0 : i32, i32
  }
  func.func @transform_3(%arg0: i32) -> (i32, i32) {
    %c0_i32 = arith.constant 0 : i32
    %c0_i32_0 = arith.constant 0 : i32
    %c0_i32_1 = arith.constant 0 : i32
    return %c0_i32, %c0_i32_0 : i32, i32
  }
  func.func @transform_4(%arg0: i32) -> (i32, i32) {
    %c0_i32 = arith.constant 0 : i32
    %c0_i32_0 = arith.constant 0 : i32
    return %arg0, %c0_i32 : i32, i32
  }
}

</mosaic_0001>

<bundles_post_ra>
// kernel: tpu_custom_call.1
= control target key start
LH: loop header
LB: loop body
LE: loop exit
PB: predicated region body
PF: predicated region fallthrough
CT: control target
= control target key end

     0   :  { %9 = vsyncpa [#allocation3], 0  ;;  %s1015_s0 = inlined_call_operand.hbm [shape: bf16[8,32], index: 0, kind: input, shape index: {}]   ;;  %s1016_s1 = inlined_call_operand.hbm [shape: f32[8,4,8], index: 1, kind: input, shape index: {}]   ;;  %s1017_s2 = inlined_call_operand.hbm [shape: bf16[48,128], index: 2, kind: input, shape index: {}]   ;;  %s1018_s3 = inlined_call_operand.vmem [shape: f32[1,128], index: 3, kind: input, shape index: {}]   ;;  %s1019_s4 = inlined_call_operand.hbm [shape: f32[8,128], index: 4, kind: output, shape index: {}]  }
   0x1   :  { %10 = vsyncpa [#allocation6], 0 }
   0x2   :  { %11 = vsyncpa [#allocation4], 0  ;;  %s750_s15 = smov [#allocation5]  }
   0x3   :  { %s27_s16 = sshll.u32 %s750_s15, 4  ;;  %s28_s16 = int_to_ptr.vmem [resolvable:$true] %s27_s16 }
   0x4   :  { %s672_s17 = scalar_lea.vmem %s28_s16, 512  ;;  %p677_p1 = scmp.lt.s32.totalorder %s28_s16, %s28_s16 }
   0x5   :  { %p673_p0 = scmp.ne.s32.totalorder %s28_s16, %s672_s17  ;;  %p678_p2 = scmp.lt.s32.totalorder %s672_s17, %s672_s17 }
   0x7   :  { %p679_p3 = por %p678_p2, %p677_p1 }
   0x9   :  { %p680_p4 = pnand %p679_p3, %p673_p0 }
   0xb   :  { %683 = shalt.err (!%p680_p4)
}
   0xc   :  { %s751_s18 = smov 64   ;;  %s752_s19 = smov 4  }
   0xd   :  { %33 = dma.hbm_to_vmem [thread:$0]  %s1016_s1, 512, %s28_s16, [#allocation6], %s751_s18, %s751_s18, %s752_s19  }
   0xe   :  { %s753_s22 = smov [#allocation2]   ;;  %s754_s24 = smov [#allocation7]  }
   0xf   :  { %s18_s23 = sshll.u32 %s753_s22, 4  ;;  %s39_s25 = sshll.u32 %s754_s24, 4  ;;  %s19_s23 = int_to_ptr.vmem [resolvable:$true] %s18_s23  ;;  %s40_s25 = int_to_ptr.vmem [resolvable:$true] %s39_s25 }
  0x10   :  { %s692_s26 = scalar_lea.vmem %s19_s23, 64  ;;  %p697_p6 = scmp.lt.s32.totalorder %s19_s23, %s19_s23 }
  0x11   :  { %p693_p5 = scmp.ne.s32.totalorder %s19_s23, %s692_s26  ;;  %p698_p7 = scmp.lt.s32.totalorder %s692_s26, %s692_s26 }
  0x13   :  { %p699_p8 = por %p698_p7, %p697_p6 }
  0x15   :  { %p700_p9 = pnand %p699_p8, %p693_p5 }
  0x17   :  { %703 = shalt.err (!%p700_p9)
}
  0x18   :  { %21 = dma.hbm_to_vmem [thread:$0]  %s1015_s0, 64, %s19_s23, [#allocation3]  }
  0x19   :  { %s712_s29 = scalar_lea.vmem %s40_s25, 384  ;;  %p717_p11 = scmp.lt.s32.totalorder %s40_s25, %s40_s25 }
  0x1a   :  { %p713_p10 = scmp.ne.s32.totalorder %s40_s25, %s712_s29  ;;  %p718_p12 = scmp.lt.s32.totalorder %s712_s29, %s712_s29 }
  0x1c   :  { %p719_p13 = por %p718_p12, %p717_p11 }
  0x1e   :  { %p720_p0 = pnand %p719_p13, %p713_p10 }
  0x20   :  { %723 = shalt.err (!%p720_p0)
}
  0x21   :  { %45 = dma.hbm_to_vmem [thread:$0]  %s1017_s2, 384, %s40_s25, [#allocation6], %s751_s18, %s751_s18, %s752_s19  }
  0x22   :  { %744 = dma.done.wait [#allocation3], 64  }
  0x23   :  { %745 = vsyncadd [#allocation3], 4294967232 }
  0x24   :  { %746 = dma.done.wait [#allocation6], 896  }
  0x25   :  { %747 = vsyncadd [#allocation6], 4294966400  ;;  %v67_v0 = vlaneseq  ;;  %v58_v6 = vld [vmem:[#allocation5] sm:$0xf]  ;;  %v59_v7 = vld [vmem:[#allocation5 + $0x4] sm:$0xf] }
  0x26   :  { %v804_v8 = vld [vmem:[#allocation5 + $0x8] sm:$0xf]  ;;  %vm107_vm0 = vcmask 60416   ;;  %v828_v29 = vld [vmem:[#allocation5 + $0xc] sm:$0xf]  ;;  %vm366_vm1 = vcmask 1041409  }
  0x27   :  { %v793_v1 = vshrl.u32 %v67_v0, 7  ;;  %v795_v2 = vand.u32 127, %v67_v0  ;;  %v846_v43 = vld [vmem:[#allocation5 + $0x10] sm:$0xf]  ;;  %v861_v56 = vld [vmem:[#allocation5 + $0x14] sm:$0xf] }
  0x28   :  { %vm368_vm2 = vcmask 1042434   ;;  %vm370_vm3 = vcmask 1043459   ;;  %vm372_vm4 = vcmask 1044484   ;;  %vm374_vm5 = vcmask 1045509   ;;  %s757_s0 = smov 32   ;;  %s758_s6 = smov [#allocation8]  }
  0x29   :  { %v798_v3 = vsub.s32 1, %v793_v1  ;;  %v801_v4 = vsub.s32 0, %v793_v1  ;;  %v389_v5 = vadd.s32 4294967292, %v795_v2  ;;  %v818_v16 = vsub.s32 2, %v793_v1  ;;  %s623_s7 = sshll.u32 %s758_s6, 4  ;;  %s624_s7 = int_to_ptr.vmem [resolvable:$true] %s623_s7 }
  0x2a   :  { %v831_v32 = vsub.s32 3, %v793_v1  ;;  %v865_v57 = vsub.s32 %v795_v2, %v793_v1  ;;  %v438_v58 = vadd.s32 4294967288, %v795_v2  ;;  %vm376_vm6 = vcmask 1046534   ;;  %s724_s8 = scalar_lea.vmem %s624_s7, 128  ;;  %p729_p2 = scmp.lt.s32.totalorder %s624_s7, %s624_s7 }
  0x2b   :  { %v807_v9 = vsub.s32 %v389_v5, %v793_v1  ;;  %v135_v10 = vrot.slane %v58_v6, %v798_v3  ;;  %v70_v11 = vrot.slane %v58_v6, %v801_v4  ;;  %v139_v12 = vrot.slane %v59_v7, %v798_v3  ;;  %p725_p1 = scmp.ne.s32.totalorder %s624_s7, %s724_s8  ;;  %p730_p3 = scmp.lt.s32.totalorder %s724_s8, %s724_s8 }
  0x2c   :  { %v74_v13 = vrot.slane %v59_v7, %v801_v4  ;;  %v143_v14 = vrot.slane %v804_v8, %v798_v3  ;;  %v78_v15 = vrot.slane %v804_v8, %v801_v4  ;;  %v203_v23 = vrot.slane %v59_v7, %v818_v16 }
  0x2d   :  { %v164_v17 = vmul.f32 %v135_v10, %v58_v6  ;;  %v99_v18 = vmul.f32 %v70_v11, %v58_v6  ;;  %v165_v19 = vmul.f32 %v139_v12, %v59_v7  ;;  %v199_v24 = vrot.slane %v58_v6, %v818_v16  ;;  %p731_p4 = por %p730_p3, %p729_p2 }
  0x2e   :  { %v100_v20 = vmul.f32 %v74_v13, %v59_v7  ;;  %v166_v27 = vmul.f32 %v143_v14, %v804_v8  ;;  %v101_v28 = vmul.f32 %v78_v15, %v804_v8  ;;  %v229_v30 = vmul.f32 %v203_v23, %v59_v7  ;;  %v64_v14 = vld [vmem:[#allocation5 + $0x18] sm:$0xf] }
  0x2f   :  { %v172_v21 = vsel %vm107_vm0, %v164_v17, 0.0  ;;  %v108_v22 = vsel %vm107_vm0, %v99_v18, 0.0  ;;  %v175_v25 = vsel %vm107_vm0, %v165_v19, 0.0  ;;  %v228_v31 = vmul.f32 %v199_v24, %v58_v6  ;;  %p732_p5 = pnand %p731_p4, %p725_p1 }
  0x30   :  { %173 = vadd.xlane.f32.xlu1 %v172_v21  ;;  %109 = vadd.xlane.f32.xlu0 %v108_v22  ;;  %v111_v26 = vsel %vm107_vm0, %v100_v20, 0.0  ;;  %v178_v33 = vsel %vm107_vm0, %v166_v27, 0.0  ;;  %v114_v34 = vsel %vm107_vm0, %v101_v28, 0.0  ;;  %v147_v35 = vrot.slane %v828_v29, %v798_v3  ;;  %v65_v28 = vld [vmem:[#allocation5 + $0x1c] sm:$0xf] }
  0x31   :  { %v82_v36 = vrot.slane %v828_v29, %v801_v4  ;;  %v239_v37 = vsel %vm107_vm0, %v229_v30, 0.0  ;;  %v236_v38 = vsel %vm107_vm0, %v228_v31, 0.0  ;;  %v263_v41 = vrot.slane %v58_v6, %v831_v32 }
  0x32   :  { %v167_v39 = vmul.f32 %v147_v35, %v828_v29  ;;  %v207_v42 = vrot.slane %v804_v8, %v818_v16  ;;  %v86_v44 = vrot.slane %v846_v43, %v801_v4  ;;  %v267_v45 = vrot.slane %v59_v7, %v831_v32 }
  0x33   :  { %v102_v40 = vmul.f32 %v82_v36, %v828_v29  ;;  %v292_v48 = vmul.f32 %v263_v41, %v58_v6  ;;  %v211_v52 = vrot.slane %v828_v29, %v818_v16  ;;  %v151_v55 = vrot.slane %v846_v43, %v798_v3 }
  0x34   :  { %176 = vadd.xlane.f32.xlu1 %v175_v25  ;;  %112 = vadd.xlane.f32.xlu0 %v111_v26  ;;  %v181_v46 = vsel %vm107_vm0, %v167_v39, 0.0  ;;  %v230_v49 = vmul.f32 %v207_v42, %v804_v8  ;;  %v103_v50 = vmul.f32 %v86_v44, %v846_v43  ;;  %v293_v51 = vmul.f32 %v267_v45, %v59_v7 }
  0x35   :  { %v117_v47 = vsel %vm107_vm0, %v102_v40, 0.0  ;;  %v300_v53 = vsel %vm107_vm0, %v292_v48, 0.0  ;;  %v231_v61 = vmul.f32 %v211_v52, %v828_v29  ;;  %v168_v62 = vmul.f32 %v151_v55, %v846_v43 }
  0x36   :  { %v242_v54 = vsel %vm107_vm0, %v230_v49, 0.0  ;;  %v120_v59 = vsel %vm107_vm0, %v103_v50, 0.0  ;;  %v303_v60 = vsel %vm107_vm0, %v293_v51, 0.0  ;;  %v90_v63 = vrot.slane %v861_v56, %v801_v4 }
  0x37   :  { %v271_v0 = vrot.slane %v804_v8, %v831_v32  ;;  %v877_v5 = vsub.s32 %v438_v58, %v793_v1  ;;  %v245_v6 = vsel %vm107_vm0, %v231_v61, 0.0  ;;  %v215_v7 = vrot.slane %v846_v43, %v818_v16  ;;  %v661_v58 = vld [vmem:[#allocation7 + $0x10] sm:$0xff]  }
  0x38   :  { %179 = vadd.xlane.f32.xlu1 %v178_v33  ;;  %115 = vadd.xlane.f32.xlu0 %v114_v34  ;;  %v184_v10 = vsel %vm107_vm0, %v168_v62, 0.0  ;;  %v104_v11 = vmul.f32 %v90_v63, %v861_v56  ;;  %v155_v13 = vrot.slane %v861_v56, %v798_v3  ;;  %v487_v15 = vadd.s32 4294967284, %v795_v2 }
  0x39   :  { %v294_v12 = vmul.f32 %v271_v0, %v804_v8  ;;  %v232_v17 = vmul.f32 %v215_v7, %v846_v43  ;;  %v94_v18 = vrot.slane %v64_v14, %v801_v4  ;;  %v275_v19 = vrot.slane %v828_v29, %v831_v32 }
  0x3a   :  { %v123_v20 = vsel %vm107_vm0, %v104_v11, 0.0  ;;  %v169_v8 = vmul.f32 %v155_v13, %v861_v56  ;;  %v896_v22 = vsub.s32 %v487_v15, %v793_v1  ;;  %v219_v23 = vrot.slane %v861_v56, %v818_v16 }
  0x3b   :  { %v306_v21 = vsel %vm107_vm0, %v294_v12, 0.0  ;;  %v105_v2 = vmul.f32 %v94_v18, %v64_v14  ;;  %v248_v24 = vsel %vm107_vm0, %v232_v17, 0.0  ;;  %v295_v26 = vmul.f32 %v275_v19, %v828_v29 }
  0x3c   :  { %240 = vadd.xlane.f32.xlu1 %v239_v37  ;;  %237 = vadd.xlane.f32.xlu0 %v236_v38  ;;  %v187_v25 = vsel %vm107_vm0, %v169_v8, 0.0  ;;  %v159_v27 = vrot.slane %v64_v14, %v798_v3  ;;  %v233_v30 = vmul.f32 %v219_v23, %v861_v56  ;;  %v98_v34 = vrot.slane %v65_v28, %v801_v4 }
  0x3d   :  { %v126_v1 = vsel %vm107_vm0, %v105_v2, 0.0  ;;  %v309_v31 = vsel %vm107_vm0, %v295_v26, 0.0  ;;  %v279_v35 = vrot.slane %v846_v43, %v831_v32  ;;  %v223_v36 = vrot.slane %v64_v14, %v818_v16 }
  0x3e   :  { %v170_v33 = vmul.f32 %v159_v27, %v64_v14  ;;  %v251_v29 = vsel %vm107_vm0, %v233_v30, 0.0  ;;  %v106_v38 = vmul.f32 %v98_v34, %v65_v28  ;;  %v163_v40 = vrot.slane %v65_v28, %v798_v3 }
  0x3f   :  { %v296_v39 = vmul.f32 %v279_v35, %v846_v43  ;;  %v227_v4 = vrot.slane %v65_v28, %v818_v16  ;;  %v283_v41 = vrot.slane %v861_v56, %v831_v32  ;;  %v234_v45 = vmul.f32 %v223_v36, %v64_v14 }
  0x40   :  { %182 = vadd.xlane.f32.xlu1 %v181_v46  ;;  %118 = vadd.xlane.f32.xlu0 %v117_v47  ;;  %v190_v37 = vsel %vm107_vm0, %v170_v33, 0.0  ;;  %v129_v42 = vsel %vm107_vm0, %v106_v38, 0.0  ;;  %v171_v46 = vmul.f32 %v163_v40, %v65_v28  ;;  %v287_v43 = vrot.slane %v64_v14, %v831_v32 }
  0x41   :  { %v312_v44 = vsel %vm107_vm0, %v296_v39, 0.0  ;;  %v235_v47 = vmul.f32 %v227_v4, %v65_v28  ;;  %v254_v3 = vsel %vm107_vm0, %v234_v45, 0.0  ;;  %v297_v16 = vmul.f32 %v283_v41, %v861_v56 }
  0x42   :  { %v193_v48 = vsel %vm107_vm0, %v171_v46, 0.0  ;;  %v291_v49 = vrot.slane %v65_v28, %v831_v32  ;;  %v298_v52 = vmul.f32 %v287_v43, %v64_v14  ;;  %v755_v56 = vmov 0.0   ;;  %v662_v32 = vld [vmem:[#allocation7 + $0x8] sm:$0xff]  }
  0x43   :  { %v257_v50 = vsel %vm107_vm0, %v235_v47, 0.0  ;;  %v315_v51 = vsel %vm107_vm0, %v297_v16, 0.0  ;;  %642 = vmatprep.subr.bf16.mxu0 %v755_v56  ;;  %vm378_vm7 = vcmask 1047559   ;;  %vm528_vm8 = vcmask 31744  }
  0x44   :  { %301 = vadd.xlane.f32.xlu1 %v300_v53  ;;  %243 = vadd.xlane.f32.xlu0 %v242_v54  ;;  %v299_v53 = vmul.f32 %v291_v49, %v65_v28  ;;  %v318_v54 = vsel %vm107_vm0, %v298_v52, 0.0  ;;  %vm756_vm9 = vmmov 0   ;;  %vm530_vm10 = vcmask 64512  }
  0x45   :  { %643 = vmatpush3.bf16.msra.mxu0 %v661_v58  ;;  %648 = vmatprep.mubr.msk.bf16.mxu0 %vm756_vm9, %v755_v56  ;;  %vm532_vm11 = vcmask 97280   ;;  %vm538_vm12 = vcmask 261120   ;;  %vm573_vm13 = vcmask 392192  }
  0x46   :  { %v321_v55 = vsel %vm107_vm0, %v299_v53, 0.0  ;;  %644 = vmatprep.subr.bf16.mxu0 %v755_v56 }
  0x48   :  { %121 = vadd.xlane.f32.xlu1 %v120_v59  ;;  %304 = vadd.xlane.f32.xlu0 %v303_v60  ;;  %v663_v59 = vld [vmem:[#allocation7] sm:$0xff]  }
  0x49   :  { %645 = vmatpush3.bf16.msra.mxu0 %v662_v32 }
  0x4a   :  { %646 = vmatprep.subr.bf16.mxu0 %v755_v56 }
  0x4c   :  { %246 = vadd.xlane.f32.xlu1 %v245_v6  ;;  %185 = vadd.xlane.f32.xlu0 %v184_v10 }
  0x4d   :  { %647 = vmatpush3.bf16.msra.mxu0 %v663_v59 }
  0x50   :  { %124 = vadd.xlane.f32.xlu1 %v123_v20  ;;  %307 = vadd.xlane.f32.xlu0 %v306_v21 }
  0x54   :  { %249 = vadd.xlane.f32.xlu1 %v248_v24  ;;  %188 = vadd.xlane.f32.xlu0 %v187_v25 }
  0x58   :  { %127 = vadd.xlane.f32.xlu1 %v126_v1  ;;  %310 = vadd.xlane.f32.xlu0 %v309_v31 }
  0x5c   :  { %252 = vadd.xlane.f32.xlu1 %v251_v29  ;;  %191 = vadd.xlane.f32.xlu0 %v190_v37 }
  0x60   :  { %130 = vadd.xlane.f32.xlu1 %v129_v42  ;;  %313 = vadd.xlane.f32.xlu0 %v312_v44 }
  0x64   :  { %255 = vadd.xlane.f32.xlu1 %v254_v3  ;;  %194 = vadd.xlane.f32.xlu0 %v193_v48 }
  0x68   :  { %258 = vadd.xlane.f32.xlu1 %v257_v50  ;;  %316 = vadd.xlane.f32.xlu0 %v315_v51 }
  0x6c   :  { %319 = vadd.xlane.f32.xlu0 %v318_v54  ;;  %322 = vadd.xlane.f32.xlu1 %v321_v55 }
  0xb9   :  { %v174_v60 = vpop.xlane.xlu1 %173  ;;  %v110_v61 = vpop.xlane.xlu0 %109 }
  0xba   :  { %v393_v1 = vrot.slane %v174_v60, %v807_v9  ;;  %v337_v33 = vrot.slane %v110_v61, %v865_v57 }
  0xbd   :  { %v177_v62 = vpop.xlane.xlu1 %176  ;;  %v113_v63 = vpop.xlane.xlu0 %112 }
  0xbe   :  { %v397_v25 = vrot.slane %v177_v62, %v807_v9  ;;  %v341_v26 = vrot.slane %v113_v63, %v865_v57 }
  0xc0   :  { %v422_v38 = vsel %vm366_vm1, %v397_v25, %v393_v1  ;;  %v367_v39 = vsel %vm366_vm1, %v341_v26, %v337_v33 }
  0xc1   :  { %v180_v0 = vpop.xlane.xlu1 %179  ;;  %v116_v6 = vpop.xlane.xlu0 %115 }
  0xc2   :  { %v401_v30 = vrot.slane %v180_v0, %v807_v9  ;;  %v345_v31 = vrot.slane %v116_v6, %v865_v57 }
  0xc4   :  { %v423_v44 = vsel %vm368_vm2, %v401_v30, %v422_v38  ;;  %v369_v45 = vsel %vm368_vm2, %v345_v31, %v367_v39 }
  0xc5   :  { %v241_v7 = vpop.xlane.xlu1 %240  ;;  %v238_v10 = vpop.xlane.xlu0 %237 }
  0xc6   :  { %v446_v34 = vrot.slane %v241_v7, %v877_v5  ;;  %v442_v35 = vrot.slane %v238_v10, %v877_v5 }
  0xc8   :  { %v471_v43 = vsel %vm366_vm1, %v446_v34, %v442_v35 }
  0xc9   :  { %v183_v11 = vpop.xlane.xlu1 %182  ;;  %v119_v12 = vpop.xlane.xlu0 %118 }
  0xca   :  { %v405_v29 = vrot.slane %v183_v11, %v807_v9  ;;  %v349_v36 = vrot.slane %v119_v12, %v865_v57 }
  0xcc   :  { %v424_v3 = vsel %vm370_vm3, %v405_v29, %v423_v44  ;;  %v371_v49 = vsel %vm370_vm3, %v349_v36, %v369_v45  ;;  %v66_v36 = vld [vmem:[#allocation2] sm:$0xf] }
  0xcd   :  { %v932_v13 = vpop.xlane.xlu1 %301  ;;  %v244_v14 = vpop.xlane.xlu0 %243 }
  0xce   :  { %v450_v37 = vrot.slane %v244_v14, %v877_v5 }
  0xd0   :  { %v472_v50 = vsel %vm368_vm2, %v450_v37, %v471_v43 }
  0xd1   :  { %v122_v15 = vpop.xlane.xlu1 %121  ;;  %v934_v17 = vpop.xlane.xlu0 %304 }
  0xd2   :  { %v353_v40 = vrot.slane %v122_v15, %v865_v57  ;;  %v495_v54 = vrot.slane %v934_v17, %v896_v22 }
  0xd4   :  { %v373_v53 = vsel %vm372_vm4, %v353_v40, %v371_v49 }
  0xd5   :  { %v247_v18 = vpop.xlane.xlu1 %246  ;;  %v186_v19 = vpop.xlane.xlu0 %185 }
  0xd6   :  { %v409_v4 = vrot.slane %v186_v19, %v807_v9  ;;  %v454_v51 = vrot.slane %v247_v18, %v877_v5 }
  0xd8   :  { %v425_v55 = vsel %vm372_vm4, %v409_v4, %v424_v3  ;;  %v473_v7 = vsel %vm370_vm3, %v454_v51, %v472_v50 }
  0xd9   :  { %v125_v20 = vpop.xlane.xlu1 %124  ;;  %v936_v21 = vpop.xlane.xlu0 %307 }
  0xda   :  { %v357_v46 = vrot.slane %v125_v20, %v865_v57  ;;  %v499_v10 = vrot.slane %v936_v21, %v896_v22 }
  0xdc   :  { %v375_v60 = vsel %vm374_vm5, %v357_v46, %v373_v53 }
  0xdd   :  { %v938_v8 = vpop.xlane.xlu1 %249  ;;  %v189_v2 = vpop.xlane.xlu0 %188 }
  0xde   :  { %v413_v47 = vrot.slane %v189_v2, %v807_v9  ;;  %v458_v58 = vrot.slane %v938_v8, %v877_v5 }
  0xe0   :  { %v426_v61 = vsel %vm374_vm5, %v413_v47, %v425_v55  ;;  %v474_v14 = vsel %vm372_vm4, %v458_v58, %v473_v7 }
  0xe1   :  { %v128_v23 = vpop.xlane.xlu1 %127  ;;  %v940_v24 = vpop.xlane.xlu0 %310 }
  0xe2   :  { %v361_v48 = vrot.slane %v128_v23, %v865_v57  ;;  %v503_v15 = vrot.slane %v940_v24, %v896_v22 }
  0xe4   :  { %v377_v63 = vsel %vm376_vm6, %v361_v48, %v375_v60 }
  0xe5   :  { %v253_v27 = vpop.xlane.xlu1 %252  ;;  %v192_v28 = vpop.xlane.xlu0 %191 }
  0xe6   :  { %v417_v16 = vrot.slane %v192_v28, %v807_v9  ;;  %v462_v62 = vrot.slane %v253_v27, %v877_v5 }
  0xe8   :  { %v427_v0 = vsel %vm376_vm6, %v417_v16, %v426_v61  ;;  %v475_v20 = vsel %vm374_vm5, %v462_v62, %v474_v14 }
  0xe9   :  { %v131_v41 = vpop.xlane.xlu1 %130  ;;  %v314_v42 = vpop.xlane.xlu0 %313 }
  0xea   :  { %v365_v52 = vrot.slane %v131_v41, %v865_v57  ;;  %v507_v21 = vrot.slane %v314_v42, %v896_v22 }
  0xec   :  { %v379_v11 = vsel %vm378_vm7, %v365_v52, %v377_v63 }
  0xed   :  { %v256_v32 = vpop.xlane.xlu1 %255  ;;  %v195_v59 = vpop.xlane.xlu0 %194 }
  0xee   :  { %v421_v57 = vrot.slane %v195_v59, %v807_v9  ;;  %v466_v6 = vrot.slane %v256_v32, %v877_v5  ;;  %v491_v9 = vrot.slane %v932_v13, %v896_v22 }
  0xf0   :  { %v428_v12 = vsel %vm378_vm7, %v421_v57, %v427_v0  ;;  %v520_v56 = vsel %vm366_vm1, %v495_v54, %v491_v9  ;;  %v476_v13 = vsel %vm376_vm6, %v466_v6, %v475_v20 }
  0xf1   :  { %v529_v17 = vsel %vm528_vm8, %v379_v11, %v428_v12  ;;  %v259_v18 = vpop.xlane.xlu1 %258  ;;  %v317_v19 = vpop.xlane.xlu0 %316  ;;  %v521_v23 = vsel %vm368_vm2, %v499_v10, %v520_v56 }
  0xf2   :  { %v470_v8 = vrot.slane %v259_v18, %v877_v5  ;;  %v511_v2 = vrot.slane %v317_v19, %v896_v22  ;;  %v522_v25 = vsel %vm370_vm3, %v503_v15, %v521_v23 }
  0xf3   :  { %v523_v1 = vsel %vm372_vm4, %v507_v21, %v522_v25 }
  0xf4   :  { %v477_v24 = vsel %vm378_vm7, %v470_v8, %v476_v13  ;;  %v524_v31 = vsel %vm374_vm5, %v511_v2, %v523_v1 }
  0xf5   :  { %v320_v26 = vpop.xlane.xlu0 %319  ;;  %v323_v27 = vpop.xlane.xlu1 %322  ;;  %v531_v28 = vsel %vm530_vm10, %v529_v17, %v477_v24 }
  0xf6   :  { %v515_v5 = vrot.slane %v320_v26, %v896_v22  ;;  %v519_v30 = vrot.slane %v323_v27, %v896_v22  ;;  %v633_v22 = vld [vmem:[%s1018_s3] ss:$0 sm:$0xff] }
  0xf8   :  { %v525_v33 = vsel %vm376_vm6, %v515_v5, %v524_v31 }
  0xf9   :  { %v526_v34 = vsel %vm378_vm7, %v519_v30, %v525_v33 }
  0xfa   :  { %v533_v35 = vsel %vm532_vm11, %v531_v28, %v526_v34 }
  0xfb   :  { %v534_v29 = vpack.c.bf16 %v533_v35, %v533_v35 }
  0xfd   :  { %536 = vrot.lane.b32.xlu0 %v534_v29, %s757_s0 }
 0x16f   :  { %v537_v37 = vpop.permute.xlu0 %536 }
 0x170   :  { %v541_v38 = vsel %vm538_vm12, %v66_v36, %v537_v37 }
 0x171   :  { %649 = vmatmul.mubr.msk.bf16.vlgmr.msra.gmra.mxu0 %vm573_vm13, %v541_v38 }
 0x231   :  { %v610_v39 = vpop.f32.mrf.mxu0 }
 0x232   :  { %v611_v40 = vadd.f32 %v633_v22, %v610_v39 }
 0x233   :  { %v650_v4 = vpop.f32.mrf.mxu0 }
 0x234   :  { %616 = vst [vmem:[#allocation8] sm:$0xff] %v611_v40 }
 0x235   :  { %v613_v41 = vpop.f32.mrf.mxu0 }
 0x236   :  { %735 = shalt.err (!%p732_p5)
}
 0x237   :  { %626 = dma.vmem_to_hbm [thread:$0]  %s624_s7, 128, %s1019_s4, [#allocation4]   ;;  %v651_v42 = vpop.f32.mrf.mxu0 }
 0x238   :  { %748 = dma.done.wait [#allocation4], 128  }
 0x239   :  { %749 = vsyncadd [#allocation4], 4294967168 }
 0x23a   :  { %630 = vsyncpa [#allocation3], 1 }
 0x23b   :  { %631 = vsyncpa [#allocation6], 1 }
 0x23c   :  { %632 = vsyncpa [#allocation4], 1 }

</bundles_post_ra>
